<compile_context>
chip_gen: v7x
topology: tpu7x:2x2x1
jax: 0.10.0
libtpu: 0.0.40
codegen_flags: <defaults>
</compile_context>

<pallas_src>
import functools

import jax
import jax.numpy as jnp
from jax.experimental import pallas as pl
from jax.experimental.pallas import tpu as pltpu


# ----------------------------------------------------------------------------
# In-kernel helpers
# ----------------------------------------------------------------------------
def _silu(v):
    return v * jax.nn.sigmoid(v)


def _taps(g, left_col, right_col):
    """K=3 'same' conv taps via XLU lane rotates + boundary-lane patch.

    g: (C, Lt) f32.  left_col / right_col: scalar 0.0 (sequence edge) or a
    (C, 1) halo activation column.  Returns (g_m1, g_p1) with
    g_m1[:, l] = g[:, l-1] and g_p1[:, l] = g[:, l+1].
    """
    c, lt = g.shape
    lane = jax.lax.broadcasted_iota(jnp.int32, (c, lt), 1)
    g_m1 = jnp.where(lane == 0, left_col, pltpu.roll(g, shift=1, axis=1))
    g_p1 = jnp.where(lane == lt - 1, right_col, pltpu.roll(g, shift=lt - 1, axis=1))
    return g_m1, g_p1


def _group_fold(col, num_groups):
    """Per-channel column -> per-group sums broadcast back to channels.  col: (C, k)."""
    c, k = col.shape
    cg = c // num_groups
    if cg == 1:                       # one channel per group: fold is identity
        return col
    pieces = []
    for gidx in range(num_groups):    # static, tiny: G slices of cg sublanes
        grp = jnp.sum(col[gidx * cg:(gidx + 1) * cg, :], axis=0, keepdims=True)
        pieces.append(jnp.broadcast_to(grp, (cg, k)))
    return jnp.concatenate(pieces, axis=0)


def _gn_scale_shift(v, gamma, beta, num_groups, eps=1e-5):
    """GroupNorm folded into per-channel scale/shift; two-pass centered variance."""
    c, l = v.shape
    n = float((c // num_groups) * l)
    mean = _group_fold(jnp.sum(v, axis=1, keepdims=True), num_groups) / n
    d = v - mean
    var = _group_fold(jnp.sum(d * d, axis=1, keepdims=True), num_groups) / n
    scale = gamma * jax.lax.rsqrt(var + eps)
    shift = beta - mean * scale
    return scale, shift


# ----------------------------------------------------------------------------
# Fused single-call path: grid = (B,), whole (C, L) slab resident in VMEM
# ----------------------------------------------------------------------------
def _fused_kernel(x_ref, p1_ref, p2_ref, w1_ref, w2r_ref, o_ref, *,
                  num_groups, mm_dtype):
    x = x_ref[0].astype(jnp.float32)                       # (C_in, L)

    gamma1 = p1_ref[:, 0:1]
    beta1 = p1_ref[:, 1:2]
    gamma2 = p2_ref[:, 0:1]
    beta2 = p2_ref[:, 1:2]
    b1 = p2_ref[:, 2:3]
    b2 = p2_ref[:, 3:4]
    br = p2_ref[:, 4:5]

    # ---- block1: GN1 + SiLU + conv1 (zeros at sequence edges, post-act) ----
    a1, s1 = _gn_scale_shift(x, gamma1, beta1, num_groups)
    g = _silu(x * a1 + s1)
    g_m1, g_p1 = _taps(g, 0.0, 0.0)
    stack1 = jnp.concatenate([g_m1, g, g_p1], axis=0).astype(mm_dtype)
    h = jnp.dot(w1_ref[...], stack1, preferred_element_type=jnp.float32) + b1

    # ---- block2 + fused 1x1 residual ---------------------------------------
    a2, s2 = _gn_scale_shift(h, gamma2, beta2, num_groups)
    g2 = _silu(h * a2 + s2)
    g2_m1, g2_p1 = _taps(g2, 0.0, 0.0)
    stack2 = jnp.concatenate([g2_m1, g2, g2_p1, x], axis=0).astype(mm_dtype)
    out = jnp.dot(w2r_ref[...], stack2, preferred_element_type=jnp.float32) + b2 + br
    o_ref[0] = out.astype(o_ref.dtype)


# ----------------------------------------------------------------------------
# Streaming 3-pass path: grid = (B, L // Lt)
# ----------------------------------------------------------------------------
def _gn_stats_kernel(x_ref, st_ref):
    """Accumulate per-channel (sum, sum_sq) of x over L-tiles (GN1 stats)."""
    t = pl.program_id(1)
    x = x_ref[0].astype(jnp.float32)                       # (C, Lt)
    tile = jnp.concatenate(
        [jnp.sum(x, axis=1, keepdims=True),
         jnp.sum(x * x, axis=1, keepdims=True)], axis=1)   # (C, 2)

    @pl.when(t == 0)
    def _init():
        st_ref[0] = tile

    @pl.when(t > 0)
    def _acc():
        st_ref[0] = st_ref[0] + tile


def _block1_kernel(x_ref, xl_ref, xr_ref, cp_ref, w1_ref,
                   h1_ref, st_ref, *, c_in, c_out, mm_dtype):
    """block1: apply folded GN1 + SiLU + conv1 -> h1; accumulate GN2 stats of h1."""
    t = pl.program_id(1)
    n_t = pl.num_programs(1)

    x = x_ref[0].astype(jnp.float32)                       # (C_in, Lt)
    a = cp_ref[0, :c_in, 0:1]                              # GN1 folded scale
    s = cp_ref[0, :c_in, 1:2]                              # GN1 folded shift
    b1 = cp_ref[0, :c_out, 2:3]                            # conv1 bias

    g = _silu(x * a + s)
    # Halo columns (module zero-pads AFTER GN+SiLU -> literal zeros at edges).
    xl = jax.lax.dynamic_slice_in_dim(xl_ref[0], t, 1, axis=1).astype(jnp.float32)
    xr = jax.lax.dynamic_slice_in_dim(xr_ref[0], t, 1, axis=1).astype(jnp.float32)
    gl = jnp.where(t == 0, 0.0, _silu(xl * a + s))
    gr = jnp.where(t == n_t - 1, 0.0, _silu(xr * a + s))

    g_m1, g_p1 = _taps(g, gl, gr)
    stack = jnp.concatenate([g_m1, g, g_p1], axis=0).astype(mm_dtype)
    h = jnp.dot(w1_ref[...], stack, preferred_element_type=jnp.float32) + b1

    h_store = h.astype(h1_ref.dtype)
    h1_ref[0] = h_store
    # GN2 stats of exactly the tensor pass C will read back (bf16-rounded if so).
    hs = h_store.astype(jnp.float32)
    tile = jnp.concatenate(
        [jnp.sum(hs, axis=1, keepdims=True),
         jnp.sum(hs * hs, axis=1, keepdims=True)], axis=1)  # (C_out, 2)

    @pl.when(t == 0)
    def _init():
        st_ref[0] = tile

    @pl.when(t > 0)
    def _acc():
        st_ref[0] = st_ref[0] + tile


def _block2_kernel(h_ref, hl_ref, hr_ref, x_ref, cp_ref, w2r_ref,
                   o_ref, *, mm_dtype):
    """block2: folded GN2 + SiLU + conv2 with the 1x1 residual fused into the matmul."""
    t = pl.program_id(1)
    n_t = pl.num_programs(1)

    h = h_ref[0].astype(jnp.float32)                       # (C_out, Lt)
    a = cp_ref[0, :, 0:1]                                  # GN2 folded scale
    s = cp_ref[0, :, 1:2]                                  # GN2 folded shift
    b2 = cp_ref[0, :, 2:3]                                 # conv2 bias
    br = cp_ref[0, :, 3:4]                                 # residual bias

    g = _silu(h * a + s)
    hl = jax.lax.dynamic_slice_in_dim(hl_ref[0], t, 1, axis=1).astype(jnp.float32)
    hr = jax.lax.dynamic_slice_in_dim(hr_ref[0], t, 1, axis=1).astype(jnp.float32)
    gl = jnp.where(t == 0, 0.0, _silu(hl * a + s))
    gr = jnp.where(t == n_t - 1, 0.0, _silu(hr * a + s))

    g_m1, g_p1 = _taps(g, gl, gr)
    # Fused stack: [tap-1; tap0; tap+1; x]  against concat([w2_flat, wr]).
    stack = jnp.concatenate(
        [g_m1, g, g_p1, x_ref[0].astype(jnp.float32)], axis=0).astype(mm_dtype)
    out = jnp.dot(w2r_ref[...], stack, preferred_element_type=jnp.float32) + b2 + br
    o_ref[0] = out.astype(o_ref.dtype)


# ----------------------------------------------------------------------------
# Wrapper glue
# ----------------------------------------------------------------------------
def _vmem_limit_bytes():
    """Half of physical VMEM, capped at 64 MiB (64 MiB v5e/v6e, 32 MiB v7x)."""
    try:
        cap = int(pltpu.get_tpu_info().vmem_capacity_bytes)
    except Exception:
        cap = 64 << 20
    return int(min(cap // 2, 64 << 20))


def _fused_vmem_bytes(c_in, c_out, length):
    """Rough VMEM footprint of the fused per-batch kernel (f32 intermediates)."""
    acts = (5 * c_in + 8 * c_out) * length * 4
    weights = 2 * c_out * (3 * c_in + 3 * c_out + c_in) * 4
    io = 2 * (c_in + c_out) * length * 4          # double-buffered in/out blocks
    return acts + weights + io


def _pick_l_tile(length, channels, target_bytes=2 << 20):
    """Largest 128-multiple divisor of L whose (C, Lt) f32 block is ~<= target."""
    if length % 128 != 0:
        # TODO(synk): pad L to a multiple of 128 instead (lane-dense stores).
        return length
    max_cols = max(128, (target_bytes // (4 * max(channels, 1))) // 128 * 128)
    best, cand = 128, 128
    while cand <= length:
        if length % cand == 0 and cand <= max_cols:
            best = cand
        cand += 128
    return best


def _tile_edges(a, lt):
    """Columns just outside each L-tile of a (B, C, L) array (zeros at the ends)."""
    b, c, length = a.shape
    n_t = length // lt
    zero = jnp.zeros((b, c, 1), a.dtype)
    if n_t == 1:
        return zero, zero
    left = jnp.concatenate([zero, a[:, :, lt - 1:length - 1:lt]], axis=2)
    right = jnp.concatenate([a[:, :, lt::lt], zero], axis=2)
    return left, right


def _fold_groupnorm(stats, gamma, beta, num_groups, length, eps=1e-5):
    """Fold accumulated (sum, sum_sq) stats + affine into per-channel scale/shift."""
    b, c, _ = stats.shape
    cg = c // num_groups
    n = float(cg * length)
    grp = stats.reshape(b, num_groups, cg, 2).sum(axis=2)   # (B, G, 2)
    mean = grp[..., 0] / n
    # TODO(synk): one-pass E[x^2]-mean^2; the fused path uses centered variance.
    var = jnp.maximum(grp[..., 1] / n - mean * mean, 0.0)
    inv = jax.lax.rsqrt(var + eps)
    mean_c = jnp.repeat(mean, cg, axis=1)
    inv_c = jnp.repeat(inv, cg, axis=1)
    scale = gamma[None, :] * inv_c
    shift = beta[None, :] - mean_c * scale
    return scale, shift


def _flat_weights(params, mm_dtype):
    """w_flat[o, k*C + i] = w[o, i, k]; residual wr appended to w2 (fused matmul)."""
    c_out, c_in, k = params["w1"].shape
    w1_flat = jnp.transpose(params["w1"], (0, 2, 1)).reshape(c_out, k * c_in)
    w2_flat = jnp.transpose(params["w2"], (0, 2, 1)).reshape(c_out, k * c_out)
    w2r_flat = jnp.concatenate([w2_flat, params["wr"]], axis=1)
    return w1_flat.astype(mm_dtype), w2r_flat.astype(mm_dtype)


def _run_fused(x, params, num_groups, mm_dtype, vmem_bytes):
    B, C_in, L = x.shape
    C_out, _, K = params["w1"].shape
    w1_flat, w2r_flat = _flat_weights(params, mm_dtype)
    p1 = jnp.stack([params["gn1_w"], params["gn1_b"]], axis=1)            # (C_in, 2)
    p2 = jnp.stack([params["gn2_w"], params["gn2_b"], params["b1"],
                    params["b2"], params["br"]], axis=1)                  # (C_out, 5)

    kernel = functools.partial(_fused_kernel, num_groups=num_groups, mm_dtype=mm_dtype)
    return pl.pallas_call(
        kernel,
        out_shape=jax.ShapeDtypeStruct((B, C_out, L), jnp.float32),
        grid=(B,),
        in_specs=[
            pl.BlockSpec((1, C_in, L), lambda b: (b, 0, 0)),
            pl.BlockSpec((C_in, 2), lambda b: (0, 0)),
            pl.BlockSpec((C_out, 5), lambda b: (0, 0)),
            pl.BlockSpec((C_out, K * C_in), lambda b: (0, 0)),
            pl.BlockSpec((C_out, 3 * C_out + C_in), lambda b: (0, 0)),
        ],
        out_specs=pl.BlockSpec((1, C_out, L), lambda b: (b, 0, 0)),
        compiler_params=pltpu.CompilerParams(
            dimension_semantics=("parallel",), vmem_limit_bytes=vmem_bytes),
    )(x, p1, p2, w1_flat, w2r_flat)


def _run_streaming(x, params, num_groups, mm_dtype, vmem_bytes, l_tile):
    B, C_in, L = x.shape
    C_out, _, K = params["w1"].shape
    c_max = max(C_in, C_out)

    lt = l_tile if l_tile is not None else _pick_l_tile(L, c_max)
    assert L % lt == 0, "L must be a multiple of the L-tile"
    n_t = L // lt

    h1_dtype = mm_dtype if mm_dtype == jnp.bfloat16 else jnp.float32
    w1_flat, w2r_flat = _flat_weights(params, mm_dtype)

    cp_red = pltpu.CompilerParams(dimension_semantics=("parallel", "arbitrary"),
                                  vmem_limit_bytes=vmem_bytes)
    cp_par = pltpu.CompilerParams(dimension_semantics=("parallel", "parallel"),
                                  vmem_limit_bytes=vmem_bytes)

    x_spec = pl.BlockSpec((1, C_in, lt), lambda b, t: (b, 0, t))
    edge_spec = lambda c: pl.BlockSpec((1, c, n_t), lambda b, t: (b, 0, 0))
    stat_spec = lambda c: pl.BlockSpec((1, c, 2), lambda b, t: (b, 0, 0))

    # ---- pass A: GN1 statistics of x ---------------------------------------
    stats1 = pl.pallas_call(
        _gn_stats_kernel,
        out_shape=jax.ShapeDtypeStruct((B, C_in, 2), jnp.float32),
        grid=(B, n_t),
        in_specs=[x_spec],
        out_specs=stat_spec(C_in),
        compiler_params=cp_red,
    )(x)

    a1, s1 = _fold_groupnorm(stats1, params["gn1_w"], params["gn1_b"], num_groups, L)
    pad_c = lambda v: jnp.pad(v, ((0, 0), (0, c_max - v.shape[1])))
    cp1 = jnp.stack(
        [pad_c(a1), pad_c(s1),
         pad_c(jnp.broadcast_to(params["b1"], (B, C_out)))], axis=-1)      # (B, c_max, 3)

    xl, xr = _tile_edges(x, lt)

    # ---- pass B: block1 (GN1 apply + SiLU + conv1) + GN2 statistics --------
    h1, stats2 = pl.pallas_call(
        functools.partial(_block1_kernel, c_in=C_in, c_out=C_out, mm_dtype=mm_dtype),
        out_shape=(jax.ShapeDtypeStruct((B, C_out, L), h1_dtype),
                   jax.ShapeDtypeStruct((B, C_out, 2), jnp.float32)),
        grid=(B, n_t),
        in_specs=[
            x_spec,
            edge_spec(C_in), edge_spec(C_in),
            pl.BlockSpec((1, c_max, 3), lambda b, t: (b, 0, 0)),
            pl.BlockSpec((C_out, K * C_in), lambda b, t: (0, 0)),
        ],
        out_specs=(pl.BlockSpec((1, C_out, lt), lambda b, t: (b, 0, t)),
                   stat_spec(C_out)),
        compiler_params=cp_red,
    )(x, xl, xr, cp1, w1_flat)

    a2, s2 = _fold_groupnorm(stats2, params["gn2_w"], params["gn2_b"], num_groups, L)
    cp2 = jnp.stack(
        [a2, s2,
         jnp.broadcast_to(params["b2"], (B, C_out)),
         jnp.broadcast_to(params["br"], (B, C_out))], axis=-1)             # (B, C_out, 4)

    hl, hr = _tile_edges(h1, lt)

    # ---- pass C: block2 (GN2 apply + SiLU + conv2 + fused 1x1 residual) ----
    out = pl.pallas_call(
        functools.partial(_block2_kernel, mm_dtype=mm_dtype),
        out_shape=jax.ShapeDtypeStruct((B, C_out, L), jnp.float32),
        grid=(B, n_t),
        in_specs=[
            pl.BlockSpec((1, C_out, lt), lambda b, t: (b, 0, t)),
            edge_spec(C_out), edge_spec(C_out),
            x_spec,
            pl.BlockSpec((1, C_out, 4), lambda b, t: (b, 0, 0)),
            pl.BlockSpec((C_out, 3 * C_out + C_in), lambda b, t: (0, 0)),
        ],
        out_specs=pl.BlockSpec((1, C_out, lt), lambda b, t: (b, 0, t)),
        compiler_params=cp_par,
    )(h1, hl, hr, x, cp2, w2r_flat)

    return out


def resnet_block_1d(x, params, *, num_groups=8, l_tile=None, use_bf16=True, fuse=None):
    """ResnetBlock1d forward.  x: (B, C_in, L) f32 (NCL).  Returns (B, C_out, L) f32."""
    B, C_in, L = x.shape
    C_out, _, K = params["w1"].shape
    assert K == 3, "kernel_size=3 (module default) only"  # TODO(synk): general K
    assert C_in % num_groups == 0 and C_out % num_groups == 0

    mm_dtype = jnp.bfloat16 if use_bf16 else jnp.float32
    vmem_bytes = _vmem_limit_bytes()

    if fuse is None:
        fuse = _fused_vmem_bytes(C_in, C_out, L) <= vmem_bytes // 2
    if fuse:
        return _run_fused(x, params, num_groups, mm_dtype, vmem_bytes)
    return _run_streaming(x, params, num_groups, mm_dtype, vmem_bytes, l_tile)


# ----------------------------------------------------------------------------
# Deterministic params (PyTorch layouts) + pure-JAX f32 reference
# ----------------------------------------------------------------------------
def make_params(key, c_in, c_out, k):
    ks = jax.random.split(key, 10)
    return {
        "gn1_w": 1.0 + 0.1 * jax.random.normal(ks[0], (c_in,), jnp.float32),
        "gn1_b": 0.1 * jax.random.normal(ks[1], (c_in,), jnp.float32),
        "w1":    0.2 * jax.random.normal(ks[2], (c_out, c_in, k), jnp.float32),
        "b1":    0.1 * jax.random.normal(ks[3], (c_out,), jnp.float32),
        "gn2_w": 1.0 + 0.1 * jax.random.normal(ks[4], (c_out,), jnp.float32),
        "gn2_b": 0.1 * jax.random.normal(ks[5], (c_out,), jnp.float32),
        "w2":    0.2 * jax.random.normal(ks[6], (c_out, c_out, k), jnp.float32),
        "b2":    0.1 * jax.random.normal(ks[7], (c_out,), jnp.float32),
        "wr":    0.2 * jax.random.normal(ks[8], (c_out, c_in), jnp.float32),
        "br":    0.1 * jax.random.normal(ks[9], (c_out,), jnp.float32),
    }


def _ref_groupnorm(x, gamma, beta, num_groups, eps=1e-5):
    b, c, l = x.shape
    xg = x.reshape(b, num_groups, -1)
    mean = xg.mean(-1, keepdims=True)
    var = xg.var(-1, keepdims=True)
    xn = ((xg - mean) * jax.lax.rsqrt(var + eps)).reshape(b, c, l)
    return xn * gamma[None, :, None] + beta[None, :, None]


def _ref_conv_same(x, w_oik, bias):
    k = w_oik.shape[2]
    pad_r = (k - 1) // 2
    pad_l = (k - 1) - pad_r
    y = jax.lax.conv_general_dilated(
        x, w_oik, window_strides=(1,), padding=[(pad_l, pad_r)],
        dimension_numbers=("NCH", "OIH", "NCH"),
        precision=jax.lax.Precision.HIGHEST)
    return y + bias[None, :, None]


def ref_resnet_block_1d(x, p, num_groups):
    h = _ref_groupnorm(x, p["gn1_w"], p["gn1_b"], num_groups)
    h = h * jax.nn.sigmoid(h)
    h = _ref_conv_same(h, p["w1"], p["b1"])
    h = _ref_groupnorm(h, p["gn2_w"], p["gn2_b"], num_groups)
    h = h * jax.nn.sigmoid(h)
    h = _ref_conv_same(h, p["w2"], p["b2"])
    res = jnp.einsum("oi,bil->bol", p["wr"], x,
                     precision=jax.lax.Precision.HIGHEST) + p["br"][None, :, None]
    return h + res


# ----------------------------------------------------------------------------
if __name__ == "__main__":
    B, C_in, C_out, L = 2, 8, 16, 256
    K, G = 3, 8

    key = jax.random.PRNGKey(0)
    kx, kp = jax.random.split(key)
    x = jax.random.normal(kx, (B, C_in, L), jnp.float32)       # PyTorch NCL input
    params = make_params(kp, C_in, C_out, K)

    ref = jax.block_until_ready(ref_resnet_block_1d(x, params, G))

    # Fused single-call-per-batch path, f32 matmul operands.
    out_fused = jax.block_until_ready(
        resnet_block_1d(x, params, num_groups=G, use_bf16=False, fuse=True))
    assert out_fused.shape == (B, C_out, L)
    err = float(jnp.max(jnp.abs(out_fused - ref)))
    assert err < 2e-2, f"fused f32 path mismatch vs reference: {err}"

    # Fused path, bf16 matmul operands / f32 accumulation.
    out_fused_bf16 = jax.block_until_ready(
        resnet_block_1d(x, params, num_groups=G, use_bf16=True, fuse=True))
    err = float(jnp.max(jnp.abs(out_fused_bf16 - ref)))
    assert err < 1e-1, f"fused bf16 path mismatch vs reference: {err}"

    # Streaming 3-pass path, L tiled into 2x128 (exercises halo + stat accumulation).
    out_stream = jax.block_until_ready(
        resnet_block_1d(x, params, num_groups=G, l_tile=128, use_bf16=False, fuse=False))
    err = float(jnp.max(jnp.abs(out_stream - ref)))
    assert err < 2e-2, f"streaming f32 path mismatch vs reference: {err}"

    print("KERNEL_OK")
</pallas_src>

<mosaic_0001>
module attributes {stable_mosaic.version = 11 : i64} {
  func.func @_fused_kernel(%arg0: i32, %arg1: memref<1x8x256xf32, #tpu.memory_space<vmem>>, %arg2: memref<8x2xf32, #tpu.memory_space<vmem>>, %arg3: memref<16x5xf32, #tpu.memory_space<vmem>>, %arg4: memref<16x24xf32, #tpu.memory_space<vmem>>, %arg5: memref<16x56xf32, #tpu.memory_space<vmem>>, %arg6: memref<1x16x256xf32, #tpu.memory_space<vmem>>) attributes {dimension_semantics = [#tpu.dimension_semantics<parallel>], iteration_bounds = array<i64: 2>, scalar_prefetch = 0 : i64, scratch_operands = 0 : i64, tpu.core_type = #tpu.core_type<tc>, window_params = [{transform_indices = @transform_0, window_bounds = array<i64: 1, 8, 256>}, {pipeline_mode = #tpu.pipeline_mode<synchronous>, transform_indices = @transform_1, window_bounds = array<i64: 8, 2>}, {pipeline_mode = #tpu.pipeline_mode<synchronous>, transform_indices = @transform_2, window_bounds = array<i64: 16, 5>}, {pipeline_mode = #tpu.pipeline_mode<synchronous>, transform_indices = @transform_3, window_bounds = array<i64: 16, 24>}, {pipeline_mode = #tpu.pipeline_mode<synchronous>, transform_indices = @transform_4, window_bounds = array<i64: 16, 56>}, {transform_indices = @transform_5, window_bounds = array<i64: 1, 16, 256>}]} {
    %c0 = arith.constant 0 : index
    %c0_0 = arith.constant 0 : index
    %c0_1 = arith.constant 0 : index
    %0 = vector.load %arg1[%c0, %c0_0, %c0_1] : memref<1x8x256xf32, #tpu.memory_space<vmem>>, vector<1x8x256xf32>
    %1 = vector.shape_cast %0 : vector<1x8x256xf32> to vector<8x256xf32>
    %c0_2 = arith.constant 0 : index
    %c0_3 = arith.constant 0 : index
    %2 = vector.load %arg2[%c0_2, %c0_3] : memref<8x2xf32, #tpu.memory_space<vmem>>, vector<8x1xf32>
    %c0_4 = arith.constant 0 : index
    %c1 = arith.constant 1 : index
    %3 = vector.load %arg2[%c0_4, %c1] : memref<8x2xf32, #tpu.memory_space<vmem>>, vector<8x1xf32>
    %c0_5 = arith.constant 0 : index
    %c0_6 = arith.constant 0 : index
    %4 = vector.load %arg3[%c0_5, %c0_6] : memref<16x5xf32, #tpu.memory_space<vmem>>, vector<16x1xf32>
    %c0_7 = arith.constant 0 : index
    %c1_8 = arith.constant 1 : index
    %5 = vector.load %arg3[%c0_7, %c1_8] : memref<16x5xf32, #tpu.memory_space<vmem>>, vector<16x1xf32>
    %c0_9 = arith.constant 0 : index
    %c2 = arith.constant 2 : index
    %6 = vector.load %arg3[%c0_9, %c2] : memref<16x5xf32, #tpu.memory_space<vmem>>, vector<16x1xf32>
    %c0_10 = arith.constant 0 : index
    %c3 = arith.constant 3 : index
    %7 = vector.load %arg3[%c0_10, %c3] : memref<16x5xf32, #tpu.memory_space<vmem>>, vector<16x1xf32>
    %c0_11 = arith.constant 0 : index
    %c4 = arith.constant 4 : index
    %8 = vector.load %arg3[%c0_11, %c4] : memref<16x5xf32, #tpu.memory_space<vmem>>, vector<16x1xf32>
    %cst = arith.constant dense<0.000000e+00> : vector<8xf32>
    %9 = vector.multi_reduction <add>, %1, %cst [1] : vector<8x256xf32> to vector<8xf32>
    %10 = vector.shape_cast %9 : vector<8xf32> to vector<8x1xf32>
    %cst_12 = arith.constant 2.560000e+02 : f32
    %11 = vector.broadcast %cst_12 : f32 to vector<8x1xf32>
    %12 = arith.divf %10, %11 : vector<8x1xf32>
    %13 = vector.broadcast %12 : vector<8x1xf32> to vector<8x256xf32>
    %14 = arith.subf %1, %13 : vector<8x256xf32>
    %15 = arith.mulf %14, %14 : vector<8x256xf32>
    %cst_13 = arith.constant dense<0.000000e+00> : vector<8xf32>
    %16 = vector.multi_reduction <add>, %15, %cst_13 [1] : vector<8x256xf32> to vector<8xf32>
    %17 = vector.shape_cast %16 : vector<8xf32> to vector<8x1xf32>
    %cst_14 = arith.constant 2.560000e+02 : f32
    %18 = vector.broadcast %cst_14 : f32 to vector<8x1xf32>
    %19 = arith.divf %17, %18 : vector<8x1xf32>
    %cst_15 = arith.constant 9.99999974E-6 : f32
    %20 = vector.broadcast %cst_15 : f32 to vector<8x1xf32>
    %21 = arith.addf %19, %20 : vector<8x1xf32>
    %22 = math.rsqrt %21 : vector<8x1xf32>
    %23 = arith.mulf %2, %22 : vector<8x1xf32>
    %24 = arith.mulf %12, %23 : vector<8x1xf32>
    %25 = arith.subf %3, %24 : vector<8x1xf32>
    %26 = vector.broadcast %23 : vector<8x1xf32> to vector<8x256xf32>
    %27 = arith.mulf %1, %26 : vector<8x256xf32>
    %28 = vector.broadcast %25 : vector<8x1xf32> to vector<8x256xf32>
    %29 = arith.addf %27, %28 : vector<8x256xf32>
    %30 = arith.negf %29 : vector<8x256xf32>
    %31 = math.exp %30 : vector<8x256xf32>
    %cst_16 = arith.constant 1.000000e+00 : f32
    %32 = vector.broadcast %cst_16 : f32 to vector<8x256xf32>
    %33 = arith.addf %32, %31 : vector<8x256xf32>
    %34 = arith.divf %32, %33 : vector<8x256xf32>
    %35 = arith.mulf %29, %34 : vector<8x256xf32>
    %36 = tpu.iota {dimensions = array<i32: 1>} : vector<8x256xi32>
    %c0_i32 = arith.constant 0 : i32
    %37 = vector.broadcast %c0_i32 : i32 to vector<8x256xi32>
    %38 = arith.cmpi eq, %36, %37 : vector<8x256xi32>
    %c1_i32 = arith.constant 1 : i32
    %39 = tpu.dynamic_rotate %35 by %c1_i32 dim 1 : vector<8x256xf32>, i32 -> vector<8x256xf32>
    %cst_17 = arith.constant 0.000000e+00 : f32
    %40 = vector.broadcast %cst_17 : f32 to vector<8x256xf32>
    %41 = arith.select %38, %40, %39 : vector<8x256xi1>, vector<8x256xf32>
    %c255_i32 = arith.constant 255 : i32
    %42 = vector.broadcast %c255_i32 : i32 to vector<8x256xi32>
    %43 = arith.cmpi eq, %36, %42 : vector<8x256xi32>
    %c255_i32_18 = arith.constant 255 : i32
    %44 = tpu.dynamic_rotate %35 by %c255_i32_18 dim 1 : vector<8x256xf32>, i32 -> vector<8x256xf32>
    %cst_19 = arith.constant 0.000000e+00 : f32
    %45 = vector.broadcast %cst_19 : f32 to vector<8x256xf32>
    %46 = arith.select %43, %45, %44 : vector<8x256xi1>, vector<8x256xf32>
    %47 = tpu.concatenate %41, %35, %46 in 0 : vector<8x256xf32>, vector<8x256xf32>, vector<8x256xf32> -> vector<24x256xf32>
    %c0_20 = arith.constant 0 : index
    %c0_21 = arith.constant 0 : index
    %48 = vector.load %arg4[%c0_20, %c0_21] : memref<16x24xf32, #tpu.memory_space<vmem>>, vector<16x24xf32>
    %cst_22 = arith.constant dense<0.000000e+00> : vector<16x256xf32>
    %49 = tpu.matmul %48, %47, %cst_22 {dimension_numbers = #tpu.dot_dimension_numbers<[1], [0], [0], [1], [0, 0, 1, 1], [], []>} : vector<16x24xf32>, vector<24x256xf32>, vector<16x256xf32> -> vector<16x256xf32>
    %50 = vector.broadcast %6 : vector<16x1xf32> to vector<16x256xf32>
    %51 = arith.addf %49, %50 : vector<16x256xf32>
    %cst_23 = arith.constant dense<0.000000e+00> : vector<16xf32>
    %52 = vector.multi_reduction <add>, %51, %cst_23 [1] : vector<16x256xf32> to vector<16xf32>
    %53 = vector.shape_cast %52 : vector<16xf32> to vector<16x1xf32>
    %54 = vector.extract_strided_slice %53 {offsets = [0, 0], sizes = [2, 1], strides = [1, 1]} : vector<16x1xf32> to vector<2x1xf32>
    %cst_24 = arith.constant dense<0.000000e+00> : vector<1xf32>
    %55 = vector.multi_reduction <add>, %54, %cst_24 [0] : vector<2x1xf32> to vector<1xf32>
    %56 = vector.shape_cast %55 : vector<1xf32> to vector<1x1xf32>
    %57 = vector.shape_cast %56 : vector<1x1xf32> to vector<1x1xf32>
    %58 = vector.broadcast %57 : vector<1x1xf32> to vector<2x1xf32>
    %59 = vector.extract_strided_slice %53 {offsets = [2, 0], sizes = [2, 1], strides = [1, 1]} : vector<16x1xf32> to vector<2x1xf32>
    %cst_25 = arith.constant dense<0.000000e+00> : vector<1xf32>
    %60 = vector.multi_reduction <add>, %59, %cst_25 [0] : vector<2x1xf32> to vector<1xf32>
    %61 = vector.shape_cast %60 : vector<1xf32> to vector<1x1xf32>
    %62 = vector.shape_cast %61 : vector<1x1xf32> to vector<1x1xf32>
    %63 = vector.broadcast %62 : vector<1x1xf32> to vector<2x1xf32>
    %64 = vector.extract_strided_slice %53 {offsets = [4, 0], sizes = [2, 1], strides = [1, 1]} : vector<16x1xf32> to vector<2x1xf32>
    %cst_26 = arith.constant dense<0.000000e+00> : vector<1xf32>
    %65 = vector.multi_reduction <add>, %64, %cst_26 [0] : vector<2x1xf32> to vector<1xf32>
    %66 = vector.shape_cast %65 : vector<1xf32> to vector<1x1xf32>
    %67 = vector.shape_cast %66 : vector<1x1xf32> to vector<1x1xf32>
    %68 = vector.broadcast %67 : vector<1x1xf32> to vector<2x1xf32>
    %69 = vector.extract_strided_slice %53 {offsets = [6, 0], sizes = [2, 1], strides = [1, 1]} : vector<16x1xf32> to vector<2x1xf32>
    %cst_27 = arith.constant dense<0.000000e+00> : vector<1xf32>
    %70 = vector.multi_reduction <add>, %69, %cst_27 [0] : vector<2x1xf32> to vector<1xf32>
    %71 = vector.shape_cast %70 : vector<1xf32> to vector<1x1xf32>
    %72 = vector.shape_cast %71 : vector<1x1xf32> to vector<1x1xf32>
    %73 = vector.broadcast %72 : vector<1x1xf32> to vector<2x1xf32>
    %74 = vector.extract_strided_slice %53 {offsets = [8, 0], sizes = [2, 1], strides = [1, 1]} : vector<16x1xf32> to vector<2x1xf32>
    %cst_28 = arith.constant dense<0.000000e+00> : vector<1xf32>
    %75 = vector.multi_reduction <add>, %74, %cst_28 [0] : vector<2x1xf32> to vector<1xf32>
    %76 = vector.shape_cast %75 : vector<1xf32> to vector<1x1xf32>
    %77 = vector.shape_cast %76 : vector<1x1xf32> to vector<1x1xf32>
    %78 = vector.broadcast %77 : vector<1x1xf32> to vector<2x1xf32>
    %79 = vector.extract_strided_slice %53 {offsets = [10, 0], sizes = [2, 1], strides = [1, 1]} : vector<16x1xf32> to vector<2x1xf32>
    %cst_29 = arith.constant dense<0.000000e+00> : vector<1xf32>
    %80 = vector.multi_reduction <add>, %79, %cst_29 [0] : vector<2x1xf32> to vector<1xf32>
    %81 = vector.shape_cast %80 : vector<1xf32> to vector<1x1xf32>
    %82 = vector.shape_cast %81 : vector<1x1xf32> to vector<1x1xf32>
    %83 = vector.broadcast %82 : vector<1x1xf32> to vector<2x1xf32>
    %84 = vector.extract_strided_slice %53 {offsets = [12, 0], sizes = [2, 1], strides = [1, 1]} : vector<16x1xf32> to vector<2x1xf32>
    %cst_30 = arith.constant dense<0.000000e+00> : vector<1xf32>
    %85 = vector.multi_reduction <add>, %84, %cst_30 [0] : vector<2x1xf32> to vector<1xf32>
    %86 = vector.shape_cast %85 : vector<1xf32> to vector<1x1xf32>
    %87 = vector.shape_cast %86 : vector<1x1xf32> to vector<1x1xf32>
    %88 = vector.broadcast %87 : vector<1x1xf32> to vector<2x1xf32>
    %89 = vector.extract_strided_slice %53 {offsets = [14, 0], sizes = [2, 1], strides = [1, 1]} : vector<16x1xf32> to vector<2x1xf32>
    %cst_31 = arith.constant dense<0.000000e+00> : vector<1xf32>
    %90 = vector.multi_reduction <add>, %89, %cst_31 [0] : vector<2x1xf32> to vector<1xf32>
    %91 = vector.shape_cast %90 : vector<1xf32> to vector<1x1xf32>
    %92 = vector.shape_cast %91 : vector<1x1xf32> to vector<1x1xf32>
    %93 = vector.broadcast %92 : vector<1x1xf32> to vector<2x1xf32>
    %94 = tpu.concatenate %58, %63, %68, %73, %78, %83, %88, %93 in 0 : vector<2x1xf32>, vector<2x1xf32>, vector<2x1xf32>, vector<2x1xf32>, vector<2x1xf32>, vector<2x1xf32>, vector<2x1xf32>, vector<2x1xf32> -> vector<16x1xf32>
    %cst_32 = arith.constant 5.120000e+02 : f32
    %95 = vector.broadcast %cst_32 : f32 to vector<16x1xf32>
    %96 = arith.divf %94, %95 : vector<16x1xf32>
    %97 = vector.broadcast %96 : vector<16x1xf32> to vector<16x256xf32>
    %98 = arith.subf %51, %97 : vector<16x256xf32>
    %99 = arith.mulf %98, %98 : vector<16x256xf32>
    %cst_33 = arith.constant dense<0.000000e+00> : vector<16xf32>
    %100 = vector.multi_reduction <add>, %99, %cst_33 [1] : vector<16x256xf32> to vector<16xf32>
    %101 = vector.shape_cast %100 : vector<16xf32> to vector<16x1xf32>
    %102 = vector.extract_strided_slice %101 {offsets = [0, 0], sizes = [2, 1], strides = [1, 1]} : vector<16x1xf32> to vector<2x1xf32>
    %cst_34 = arith.constant dense<0.000000e+00> : vector<1xf32>
    %103 = vector.multi_reduction <add>, %102, %cst_34 [0] : vector<2x1xf32> to vector<1xf32>
    %104 = vector.shape_cast %103 : vector<1xf32> to vector<1x1xf32>
    %105 = vector.shape_cast %104 : vector<1x1xf32> to vector<1x1xf32>
    %106 = vector.broadcast %105 : vector<1x1xf32> to vector<2x1xf32>
    %107 = vector.extract_strided_slice %101 {offsets = [2, 0], sizes = [2, 1], strides = [1, 1]} : vector<16x1xf32> to vector<2x1xf32>
    %cst_35 = arith.constant dense<0.000000e+00> : vector<1xf32>
    %108 = vector.multi_reduction <add>, %107, %cst_35 [0] : vector<2x1xf32> to vector<1xf32>
    %109 = vector.shape_cast %108 : vector<1xf32> to vector<1x1xf32>
    %110 = vector.shape_cast %109 : vector<1x1xf32> to vector<1x1xf32>
    %111 = vector.broadcast %110 : vector<1x1xf32> to vector<2x1xf32>
    %112 = vector.extract_strided_slice %101 {offsets = [4, 0], sizes = [2, 1], strides = [1, 1]} : vector<16x1xf32> to vector<2x1xf32>
    %cst_36 = arith.constant dense<0.000000e+00> : vector<1xf32>
    %113 = vector.multi_reduction <add>, %112, %cst_36 [0] : vector<2x1xf32> to vector<1xf32>
    %114 = vector.shape_cast %113 : vector<1xf32> to vector<1x1xf32>
    %115 = vector.shape_cast %114 : vector<1x1xf32> to vector<1x1xf32>
    %116 = vector.broadcast %115 : vector<1x1xf32> to vector<2x1xf32>
    %117 = vector.extract_strided_slice %101 {offsets = [6, 0], sizes = [2, 1], strides = [1, 1]} : vector<16x1xf32> to vector<2x1xf32>
    %cst_37 = arith.constant dense<0.000000e+00> : vector<1xf32>
    %118 = vector.multi_reduction <add>, %117, %cst_37 [0] : vector<2x1xf32> to vector<1xf32>
    %119 = vector.shape_cast %118 : vector<1xf32> to vector<1x1xf32>
    %120 = vector.shape_cast %119 : vector<1x1xf32> to vector<1x1xf32>
    %121 = vector.broadcast %120 : vector<1x1xf32> to vector<2x1xf32>
    %122 = vector.extract_strided_slice %101 {offsets = [8, 0], sizes = [2, 1], strides = [1, 1]} : vector<16x1xf32> to vector<2x1xf32>
    %cst_38 = arith.constant dense<0.000000e+00> : vector<1xf32>
    %123 = vector.multi_reduction <add>, %122, %cst_38 [0] : vector<2x1xf32> to vector<1xf32>
    %124 = vector.shape_cast %123 : vector<1xf32> to vector<1x1xf32>
    %125 = vector.shape_cast %124 : vector<1x1xf32> to vector<1x1xf32>
    %126 = vector.broadcast %125 : vector<1x1xf32> to vector<2x1xf32>
    %127 = vector.extract_strided_slice %101 {offsets = [10, 0], sizes = [2, 1], strides = [1, 1]} : vector<16x1xf32> to vector<2x1xf32>
    %cst_39 = arith.constant dense<0.000000e+00> : vector<1xf32>
    %128 = vector.multi_reduction <add>, %127, %cst_39 [0] : vector<2x1xf32> to vector<1xf32>
    %129 = vector.shape_cast %128 : vector<1xf32> to vector<1x1xf32>
    %130 = vector.shape_cast %129 : vector<1x1xf32> to vector<1x1xf32>
    %131 = vector.broadcast %130 : vector<1x1xf32> to vector<2x1xf32>
    %132 = vector.extract_strided_slice %101 {offsets = [12, 0], sizes = [2, 1], strides = [1, 1]} : vector<16x1xf32> to vector<2x1xf32>
    %cst_40 = arith.constant dense<0.000000e+00> : vector<1xf32>
    %133 = vector.multi_reduction <add>, %132, %cst_40 [0] : vector<2x1xf32> to vector<1xf32>
    %134 = vector.shape_cast %133 : vector<1xf32> to vector<1x1xf32>
    %135 = vector.shape_cast %134 : vector<1x1xf32> to vector<1x1xf32>
    %136 = vector.broadcast %135 : vector<1x1xf32> to vector<2x1xf32>
    %137 = vector.extract_strided_slice %101 {offsets = [14, 0], sizes = [2, 1], strides = [1, 1]} : vector<16x1xf32> to vector<2x1xf32>
    %cst_41 = arith.constant dense<0.000000e+00> : vector<1xf32>
    %138 = vector.multi_reduction <add>, %137, %cst_41 [0] : vector<2x1xf32> to vector<1xf32>
    %139 = vector.shape_cast %138 : vector<1xf32> to vector<1x1xf32>
    %140 = vector.shape_cast %139 : vector<1x1xf32> to vector<1x1xf32>
    %141 = vector.broadcast %140 : vector<1x1xf32> to vector<2x1xf32>
    %142 = tpu.concatenate %106, %111, %116, %121, %126, %131, %136, %141 in 0 : vector<2x1xf32>, vector<2x1xf32>, vector<2x1xf32>, vector<2x1xf32>, vector<2x1xf32>, vector<2x1xf32>, vector<2x1xf32>, vector<2x1xf32> -> vector<16x1xf32>
    %cst_42 = arith.constant 5.120000e+02 : f32
    %143 = vector.broadcast %cst_42 : f32 to vector<16x1xf32>
    %144 = arith.divf %142, %143 : vector<16x1xf32>
    %cst_43 = arith.constant 9.99999974E-6 : f32
    %145 = vector.broadcast %cst_43 : f32 to vector<16x1xf32>
    %146 = arith.addf %144, %145 : vector<16x1xf32>
    %147 = math.rsqrt %146 : vector<16x1xf32>
    %148 = arith.mulf %4, %147 : vector<16x1xf32>
    %149 = arith.mulf %96, %148 : vector<16x1xf32>
    %150 = arith.subf %5, %149 : vector<16x1xf32>
    %151 = vector.broadcast %148 : vector<16x1xf32> to vector<16x256xf32>
    %152 = arith.mulf %51, %151 : vector<16x256xf32>
    %153 = vector.broadcast %150 : vector<16x1xf32> to vector<16x256xf32>
    %154 = arith.addf %152, %153 : vector<16x256xf32>
    %155 = arith.negf %154 : vector<16x256xf32>
    %156 = math.exp %155 : vector<16x256xf32>
    %cst_44 = arith.constant 1.000000e+00 : f32
    %157 = vector.broadcast %cst_44 : f32 to vector<16x256xf32>
    %158 = arith.addf %157, %156 : vector<16x256xf32>
    %159 = arith.divf %157, %158 : vector<16x256xf32>
    %160 = arith.mulf %154, %159 : vector<16x256xf32>
    %161 = tpu.iota {dimensions = array<i32: 1>} : vector<16x256xi32>
    %c0_i32_45 = arith.constant 0 : i32
    %162 = vector.broadcast %c0_i32_45 : i32 to vector<16x256xi32>
    %163 = arith.cmpi eq, %161, %162 : vector<16x256xi32>
    %c1_i32_46 = arith.constant 1 : i32
    %164 = tpu.dynamic_rotate %160 by %c1_i32_46 dim 1 : vector<16x256xf32>, i32 -> vector<16x256xf32>
    %cst_47 = arith.constant 0.000000e+00 : f32
    %165 = vector.broadcast %cst_47 : f32 to vector<16x256xf32>
    %166 = arith.select %163, %165, %164 : vector<16x256xi1>, vector<16x256xf32>
    %c255_i32_48 = arith.constant 255 : i32
    %167 = vector.broadcast %c255_i32_48 : i32 to vector<16x256xi32>
    %168 = arith.cmpi eq, %161, %167 : vector<16x256xi32>
    %c255_i32_49 = arith.constant 255 : i32
    %169 = tpu.dynamic_rotate %160 by %c255_i32_49 dim 1 : vector<16x256xf32>, i32 -> vector<16x256xf32>
    %cst_50 = arith.constant 0.000000e+00 : f32
    %170 = vector.broadcast %cst_50 : f32 to vector<16x256xf32>
    %171 = arith.select %168, %170, %169 : vector<16x256xi1>, vector<16x256xf32>
    %172 = tpu.concatenate %166, %160, %171, %1 in 0 : vector<16x256xf32>, vector<16x256xf32>, vector<16x256xf32>, vector<8x256xf32> -> vector<56x256xf32>
    %c0_51 = arith.constant 0 : index
    %c0_52 = arith.constant 0 : index
    %173 = vector.load %arg5[%c0_51, %c0_52] : memref<16x56xf32, #tpu.memory_space<vmem>>, vector<16x56xf32>
    %cst_53 = arith.constant dense<0.000000e+00> : vector<16x256xf32>
    %174 = tpu.matmul %173, %172, %cst_53 {dimension_numbers = #tpu.dot_dimension_numbers<[1], [0], [0], [1], [0, 0, 1, 1], [], []>} : vector<16x56xf32>, vector<56x256xf32>, vector<16x256xf32> -> vector<16x256xf32>
    %175 = vector.broadcast %7 : vector<16x1xf32> to vector<16x256xf32>
    %176 = arith.addf %174, %175 : vector<16x256xf32>
    %177 = vector.broadcast %8 : vector<16x1xf32> to vector<16x256xf32>
    %178 = arith.addf %176, %177 : vector<16x256xf32>
    %c0_54 = arith.constant 0 : index
    %c0_55 = arith.constant 0 : index
    %c0_56 = arith.constant 0 : index
    %179 = vector.load %arg6[%c0_54, %c0_55, %c0_56] : memref<1x16x256xf32, #tpu.memory_space<vmem>>, vector<1x16x256xf32>
    %180 = vector.shape_cast %179 : vector<1x16x256xf32> to vector<16x256xf32>
    %181 = vector.shape_cast %178 : vector<16x256xf32> to vector<1x16x256xf32>
    tpu.vector_store %arg6[%c0_54, %c0_55, %c0_56], %181 {strides = array<i32>} : memref<1x16x256xf32, #tpu.memory_space<vmem>>, vector<1x16x256xf32>,
    return
  }
  func.func @transform_0(%arg0: i32) -> (i32, i32, i32) {
    %c0_i32 = arith.constant 0 : i32
    %c0_i32_0 = arith.constant 0 : i32
    %c0_i32_1 = arith.constant 0 : i32
    return %arg0, %c0_i32, %c0_i32_0 : i32, i32, i32
  }
  func.func @transform_1(%arg0: i32) -> (i32, i32) {
    %c0_i32 = arith.constant 0 : i32
    %c0_i32_0 = arith.constant 0 : i32
    %c0_i32_1 = arith.constant 0 : i32
    return %c0_i32, %c0_i32_0 : i32, i32
  }
  func.func @transform_2(%arg0: i32) -> (i32, i32) {
    %c0_i32 = arith.constant 0 : i32
    %c0_i32_0 = arith.constant 0 : i32
    %c0_i32_1 = arith.constant 0 : i32
    return %c0_i32, %c0_i32_0 : i32, i32
  }
  func.func @transform_3(%arg0: i32) -> (i32, i32) {
    %c0_i32 = arith.constant 0 : i32
    %c0_i32_0 = arith.constant 0 : i32
    %c0_i32_1 = arith.constant 0 : i32
    return %c0_i32, %c0_i32_0 : i32, i32
  }
  func.func @transform_4(%arg0: i32) -> (i32, i32) {
    %c0_i32 = arith.constant 0 : i32
    %c0_i32_0 = arith.constant 0 : i32
    %c0_i32_1 = arith.constant 0 : i32
    return %c0_i32, %c0_i32_0 : i32, i32
  }
  func.func @transform_5(%arg0: i32) -> (i32, i32, i32) {
    %c0_i32 = arith.constant 0 : i32
    %c0_i32_0 = arith.constant 0 : i32
    %c0_i32_1 = arith.constant 0 : i32
    return %arg0, %c0_i32, %c0_i32_0 : i32, i32, i32
  }
}

</mosaic_0001>

<bundles_post_ra>
// kernel: tpu_custom_call.1
= control target key start
LH: loop header
LB: loop body
LE: loop exit
PB: predicated region body
PF: predicated region fallthrough
CT: control target
= control target key end

     0   :  { %10 = vsyncpa [#allocation3], 0  ;;  %s1532_s0 = inlined_call_operand.vmem [shape: f32[2,8,256], index: 0, kind: input, shape index: {}]   ;;  %s1533_s1 = inlined_call_operand.vmem [shape: f32[8,2], index: 1, kind: input, shape index: {}]   ;;  %s1534_s2 = inlined_call_operand.vmem [shape: f32[16,5], index: 2, kind: input, shape index: {}]   ;;  %s1535_s3 = inlined_call_operand.hbm [shape: f32[16,24], index: 3, kind: input, shape index: {}]   ;;  %s1536_s4 = inlined_call_operand.vmem [shape: f32[16,56], index: 4, kind: input, shape index: {}]   ;;  %s1537_s5 = inlined_call_operand.hbm [shape: f32[2,16,256], index: 5, kind: output, shape index: {}]  }
   0x1   :  { %11 = vsyncpa [#allocation4], 0 }
   0x2   :  { %13 = vsyncpa [#allocation4 + $0x1], 0  ;;  %s1237_s18 = smov 0   ;;  %s1239_s19 = smov 0  }
   0x3   :  { %s1241_s20 = smov 0   ;;  %s1243_s21 = smov 0  }
   0x4 LB: > { %s1258_s22 = sadd.s32 4294967295, %s1190_s21   ;;  %s908_s23 = sadd.s32 4294967294, %s1190_s21   ;;  %s1190_s21 = sphi %s1243_s21, %s1553_s21   ;;  %s1186_s20 = sphi %s1241_s20, %s1552_s20   ;;  %s1182_s19 = sphi %s1239_s19, %s1551_s19   ;;  %s1178_s18 = sphi %s1237_s18, %s1550_s18  }
   0x5   : > { %s1262_s24 = sadd.s32 1, %s1190_s21   ;;  %s136_s25 = sadd.s32 1, %s1186_s20 }
   0x6   : > { %s133_s26 = ssub.s32 %s1190_s21, %s1262_s24  ;;  %p146_p0 = scmp.ne.s32.totalorder %s1186_s20, %s1182_s19 }
   0x7   : > { %p134_p1 = scmp.eq.s32.totalorder %s133_s26, 0  ;;  %p147_p2 = scmp.eq.s32.totalorder %s1258_s22, 1 }
   0x8   : > { %p152_p3 = scmp.ne.s32.totalorder %s1182_s19, %s1178_s18  ;;  %p153_p4 = scmp.eq.s32.totalorder %s908_s23, 1 }
   0x9   : > { %s1273_s27 = scalar_select %p134_p1, %s1186_s20, %s136_s25  }
   0xa   : > { %p1275_p5 = por %p147_p2, %p146_p0  ;;  %p1279_p6 = por %p153_p4, %p152_p3 }
   0xb   : > { %p909_p7 = scmp.ge.s32.totalorder %s1190_s21, 1  ;;  %p160_p8 = scmp.lt.s32.totalorder %s1190_s21, 3 }
   0xc   : > { %s1541_s28 = scalar_select %p1275_p5, 1, 0 }
   0xd   : > { %s1542_s29 = scalar_select %p1279_p6, 1, 0 }
   0xe   : > { %p1538_p9 = scmp.eq.s32.totalorder %s1258_s22, 0  ;;  %p1286_p10 = pnand %p909_p7, %p160_p8 }
   0xf   : > { %s1192_s6 = smov [#allocation2]   ;;  %s1096_s11 = scalar_lea.hbm %s1535_s3, 256 }
  0x10   : > { %s1543_s30 = scalar_select %p1286_p10, 1, 0 }
  0x11   : > { %s178_s7 = sshll.u32 %s1192_s6, 4  ;;  %p973_p11 = pneg %p1286_p10  ;;  %s179_s7 = int_to_ptr.vmem [resolvable:$true] %s178_s7 }
  0x12   : > { %p1097_p13 = scmp.ne.s32.totalorder %s1535_s3, %s1096_s11  ;;  %p1103_p3 = scmp.lt.u32.totalorder %s1096_s11, %s1535_s3 }
  0x13   : > { %p1294_p12 = pnand %p1538_p9, %p973_p11 }
  0x15   : > { %p1098_p0 = pneg %p1294_p12 }
  0x17   : > { %p1099_p1 = pnand %p1098_p0, %p1097_p13 }
  0x19   : > { %p1100_p2 = pneg %p1099_p1 }
  0x1b   : > { %p1105_p4 = pnand %p1103_p3, %p1100_p2 }
  0x1d   : > { %1108 = shalt.err (!%p1105_p4)
}
  0x1e   : > { %s1109_s16 = scalar_lea.vmem %s179_s7, 256  ;;  %p1117_p9 = scmp.lt.s32.totalorder %s179_s7, %s179_s7 }
  0x1f   : > { %p1110_p7 = scmp.ne.s32.totalorder %s179_s7, %s1109_s16  ;;  %p1118_p6 = scmp.lt.s32.totalorder %s1109_s16, %s1109_s16 }
  0x21   : > { %p1112_p8 = pnand %p1110_p7, %p1098_p0  ;;  %p1119_p5 = por %p1118_p6, %p1117_p9 }
  0x23   : > { %p1113_p11 = pneg %p1112_p8 }
  0x25   : > { %p1120_p10 = pnand %p1119_p5, %p1113_p11 }
  0x27   : > { %1123 = shalt.err (!%p1120_p10)
}
  0x28   : > { %s1193_s17 = smov 128   ;;  %s1194_s23 = smov 8  }
  0x29   : > { %976 = dma.hbm_to_vmem [thread:$0]  (!%p1294_p12), %s1535_s3, 256, %s179_s7, [#allocation3], %s1193_s17, %s1193_s17, %s1194_s23  }
  0x2a   : > { %p1545_p13 = scmp.ne.s32.totalorder %s1543_s30, 0 }
  0x2b   : > { %p1546_p1 = scmp.eq.s32.totalorder (!%p1545_p13), %s1258_s22, 0 }
  0x2c   : > { %205 = sbr.rel (%p1545_p13) target bundleno = 2126 (0x84e), region = 40 }
  0x33   : > { %1169 = dma.done.wait (%p1546_p1), [#allocation3], 256   ;;  %p1547_p0 = pmov %p1546_p1 }
  0x34   : > { %p233_p5 = scmp.lt.s32.totalorder %s1258_s22, 1  ;;  %v1195_v10 = vmov 0   ;;  %v1196_v14 = vmov 1   ;;  %v240_v15 = vld [vmem:[%s1533_s1] sm:$0xff]  ;;  %s1197_s12 = smov 1   ;;  %v1198_v37 = vmov 0.0   ;;  %v293_v42 = vlaneseq }
  0x35   : > { %1171 = vsyncadd (%p1547_p0), [#allocation3], 4294967040  ;;  %1030 = vset.pattern.permute.xlu1 %v1195_v10  ;;  %1031 = vset.pattern.permute.xlu0 %v1196_v14  ;;  %v1199_v39 = vmov 2   ;;  %s1200_s13 = smov 127   ;;  %v1348_v40 = vld [vmem:[%s1534_s2] sm:$0xff]  ;;  %v1354_v41 = vld [vmem:[%s1534_s2 + $0x8] sm:$0xff] }
  0x36   : > { %s234_s6 = scalar_select %p233_p5, %s1258_s22, 1  ;;  %401 = vmatprep.mubr.f32.mxu0 %v1198_v37  ;;  %791 = vmatprep.mubr.f32.mxu1 %v1198_v37  ;;  %v1357_v43 = vand.u32 127, %v293_v42  ;;  %vm1201_vm2 = vmmov 1   ;;  %v318_v56 = vld [vmem:[#allocation2] sm:$0xff]  ;;  %vm330_vm6 = vcmask 195584   ;;  %v319_v57 = vld [vmem:[#allocation2 + $0x8] sm:$0xff] }
  0x37   : > { %vm420_vm7 = vcmask 1041408   ;;  %vm492_vm8 = vcmask 1043456   ;;  %vm494_vm9 = vcmask 1045504   ;;  %vm720_vm12 = vcmask 457728   ;;  %s945_s30 = sshll.u32 %s1258_s22, 9  ;;  %p1548_p9 = scmp.ne.s32.totalorder %s1541_s28, 0 }
  0x38   : > { %s944_s9 = sshll.u32 %s234_s6, 4  ;;  %vm302_vm0 = vcmp.lt.s32.totalorder %v1357_v43, 1  ;;  %vm946_vm1 = vcmp.ne.s32.totalorder %v1357_v43, 0  ;;  %v1366_v49 = vadd.s32 128, %v1357_v43  ;;  %vm313_vm4 = vcmp.lt.s32.totalorder %v1357_v43, 127  ;;  %v711_v43 = vld [vmem:[%s1536_s4 + $0x8] sm:$0xff] }
  0x39   : > { %s237_s11 = scalar_lea.vmem %s1532_s0, %s944_s9  ;;  %vm951_vm3 = vmpackc.low %vm1201_vm2, %vm946_vm1  ;;  %s230_s9 = sand.u32 1, %s1182_s19  }
  0x3a   : > { %v1325_v0 = vld [vmem:[%s237_s11] sm:$0xff]  ;;  %v1327_v1 = vld [vmem:[%s237_s11 + $0x8] sm:$0xff]  ;;  %vm947_vm5 = vcmp.ne.s32.totalorder %v1366_v49, 255  ;;  %vm956_vm10 = vmpackc.low %vm946_vm1, %vm946_vm1  ;;  %s914_s10 = sshll.u32 %s230_s9, 5  ;;  %s1491_s14 = scalar_lea.sflag [#allocation4], %s230_s9 }
  0x3b   : > { %v243_v2 = vadd.f32 %v1327_v1, %v1325_v0  ;;  %vm963_vm11 = vmpackc.low %vm947_vm5, %vm947_vm5  ;;  %v710_v49 = vld [vmem:[%s1536_s4] sm:$0xff]  ;;  %s232_s8 = scalar_lea.vmem [#allocation5], %s914_s10  ;;  %s1204_s15 = smov [#allocation5]  }
  0x3c   : > { %s834_s11 = sshll.u32 %s232_s8, 4  ;;  %s1128_s16 = sshll.u32 %s1204_s15, 4  ;;  %s1484_s11 = int_to_ptr.vmem [resolvable:$true] %s834_s11  ;;  %s1129_s16 = int_to_ptr.vmem [resolvable:$false] %s1128_s16 }
  0x3d   : > { %244 = vadd.xlane.f32.xlu0 %v243_v2  ;;  %s1124_s22 = scalar_lea.vmem %s1484_s11, 512  ;;  %s1130_s17 = scalar_lea.vmem %s1129_s16, 1024 }
  0x3e   : > { %p1125_p6 = scmp.ne.s32.totalorder %s1484_s11, %s1124_s22  ;;  %p1131_p2 = scmp.lt.s32.totalorder %s1484_s11, %s1129_s16 }
  0x3f   : > { %p1132_p3 = scmp.lt.s32.totalorder %s1130_s17, %s1124_s22 }
  0x40   : > { %p1126_p10 = pnand %p1125_p6, %p1548_p9 }
  0x41   : > { %p1133_p4 = por %p1132_p3, %p1131_p2 }
  0x42   : > { %p1127_p12 = pneg %p1126_p10 }
  0x44   : > { %p1134_p7 = pnand %p1133_p4, %p1127_p12 }
  0xca   : > { %v245_v3 = vpop.xlane.xlu0 %244 }
  0xcb   : > { %v247_v4 = vmul.f32 0.00390625, %v245_v3 }
  0xcd   : > { %v248_v5 = vsub.f32 %v1325_v0, %v247_v4  ;;  %v249_v6 = vsub.f32 %v1327_v1, %v247_v4 }
  0xcf   : > { %v250_v7 = vmul.f32 %v248_v5, %v248_v5  ;;  %v251_v8 = vmul.f32 %v249_v6, %v249_v6 }
  0xd1   : > { %v252_v9 = vadd.f32 %v251_v8, %v250_v7 }
  0xd3   : > { %253 = vadd.xlane.f32.xlu0 %v252_v9 }
 0x160   : > { %v254_v11 = vpop.xlane.xlu0 %253 }
 0x161   : > { %v255_v12 = vmul.f32 0.00390625, %v254_v11 }
 0x163   : > { %v256_v13 = vadd.f32 1e-05, %v255_v12 }
 0x165   : > { %1066 = vrsqrt.f32 %v256_v13 }
 0x16f   : > { %v1067_v16 = vpop.eup %1066 }
 0x170   : > { %v258_v17 = vmul.f32 %v1067_v16, %v240_v15 }
 0x172   : > { %v259_v18 = vmul.f32 %v258_v17, %v247_v4 }
 0x174   : > { %261 = vrot.lane.b32.xlu1 %v259_v18, %s1197_s12 }
 0x178   : > { %267 = vperm.xlu1 %1030, %v258_v17  }
 0x17c   : > { %1037 = vset.pattern.permute.xlu1 %v1199_v39 }
 0x1e6   : > { %v262_v19 = vpop.permute.xlu1 %261 }
 0x1e7   : > { %v264_v20 = vsub.f32 %v240_v15, %v262_v19 }
 0x1e9   : > { %274 = vperm.xlu0 %1031, %v264_v20  }
 0x1ed   : > { %1039 = vset.pattern.permute.xlu0 %v1195_v10 }
 0x1f7   : > { %v268_v21 = vpop.permute.xlu1 %267 }
 0x1f8   : > { %v270_v22 = vmul.f32 %v268_v21, %v1325_v0  ;;  %v271_v23 = vmul.f32 %v268_v21, %v1327_v1 }
 0x268   : > { %v275_v24 = vpop.permute.xlu0 %274 }
 0x269   : > { %v277_v25 = vadd.f32 %v275_v24, %v270_v22  ;;  %v278_v26 = vadd.f32 %v275_v24, %v271_v23 }
 0x26b   : > { %v917_v27 = vmul.f32 -1.442695, %v277_v25  ;;  %v918_v28 = vmul.f32 -1.442695, %v278_v26 }
 0x26d   : > { %1068 = vpow2.f32 %v917_v27 }
 0x26e   : > { %1070 = vpow2.f32 %v918_v28 }
 0x277   : > { %v1069_v29 = vpop.eup %1068 }
 0x278   : > { %v1071_v30 = vpop.eup %1070  ;;  %v285_v31 = vadd.f32 1.0, %v1069_v29 }
 0x279   : > { %v286_v32 = vadd.f32 1.0, %v1071_v30 }
 0x27a   : > { %1072 = vrcp.f32 %v285_v31 }
 0x27b   : > { %1074 = vrcp.f32 %v286_v32 }
 0x284   : > { %v1073_v33 = vpop.eup %1072 }
 0x285   : > { %v1075_v34 = vpop.eup %1074  ;;  %v291_v35 = vmul.f32 %v1073_v33, %v277_v25 }
 0x286   : > { %v292_v36 = vmul.f32 %v1075_v34, %v278_v26 }
 0x288   : > { %v1032_v38 = vpack.i.bf16 %v292_v36, %v291_v35 }
 0x28a   : > { %1033 = vrot.lane.b32.xlu1 %v1032_v38, %s1197_s12 }
 0x28e   : > { %309 = vrot.lane.b32.xlu1 %v291_v35, %s1200_s13 }
 0x292   : > { %311 = vrot.lane.b32.xlu1 %v292_v36, %s1200_s13 }
 0x296   : > { %322 = vperm.xlu1 %1037, %v1348_v40  }
 0x29a   : > { %327 = vperm.xlu1 %1037, %v1354_v41  }
 0x29e   : > { %1038 = vset.pattern.permute.xlu1 %v1195_v10 }
 0x2fc   : > { %v1034_v44 = vpop.permute.xlu1 %1033 }
 0x2fd   : > { %v1036_v45 = vunpack.i.h.bf16 %v1034_v44  ;;  %v1035_v46 = vunpack.i.l.bf16 %v1034_v44 }
 0x2ff   : > { %v303_v47 = vsel %vm302_vm0, %v1035_v46, %v1036_v45  ;;  %v304_v48 = vsel %vm302_vm0, %v1036_v45, %v1035_v46 }
 0x300   : > { %v310_v50 = vpop.permute.xlu1 %309  ;;  %v948_v51 = vpack.c.bf16 %v292_v36, %v303_v47  ;;  %v950_v52 = vpack.c.bf16 %v291_v35, %v304_v48 }
 0x302   : > { %949 = vmatprep.subr.bf16.mxu0 %v948_v51 }
 0x303   : > { %952 = vmatpush1.bf16.msk.msra.mxu0 %vm951_vm3, %v950_v52 }
 0x304   : > { %v312_v53 = vpop.permute.xlu1 %311 }
 0x305   : > { %v315_v54 = vsel %vm313_vm4, %v312_v53, %v310_v50  ;;  %v314_v55 = vsel %vm313_vm4, %v310_v50, %v312_v53 }
 0x306   : > { %922 = vmatprep.subr.msk.mxu0 %vm947_vm5, %v315_v54 }
 0x307   : > { %342 = vmatpush1.msra.mxu0 %v314_v55 }
 0x308   : > { %923 = vmatmul.mubr.msk.f32.vlgmr.msra.gmra.mrb[0].mxu0 %vm330_vm6, %v318_v56 }
 0x309   : > { %407 = vmatprep.mubr.f32.mxu0 %v1198_v37 }
 0x30c   : > { %924 = vmatmul.mubr.msk.f32.gmra.mrb[2].mxu0 %vm330_vm6, %v319_v57 }
 0x315   : > { %v323_v58 = vpop.permute.xlu1 %322 }
 0x319   : > { %v328_v63 = vpop.permute.xlu1 %327 }
 0x3db   : > { %v403_v59 = vpop.f32.mrb[0].mxu0 }
 0x3dc   : > { %v1379_v60 = vadd.f32 %v403_v59, %v323_v58  ;;  %v405_v61 = vpop.f32.mrb[1].mxu0 }
 0x3dd   : > { %v1381_v62 = vadd.f32 %v405_v61, %v323_v58 }
 0x3df   : > { %v409_v2 = vpop.f32.mrb[2].mxu0  ;;  %v414_v3 = vadd.f32 %v1381_v62, %v1379_v60 }
 0x3e0   : > { %v1385_v4 = vadd.f32 %v409_v2, %v328_v63  ;;  %v411_v5 = vpop.f32.mrb[3].mxu0 }
 0x3e1   : > { %v1387_v6 = vadd.f32 %v411_v5, %v328_v63  ;;  %415 = vadd.xlane.f32.xlu1 %v414_v3 }
 0x3e3   : > { %v417_v7 = vadd.f32 %v1387_v6, %v1385_v4 }
 0x3e5   : > { %418 = vadd.xlane.f32.xlu0 %v417_v7 }
 0x46e   : > { %v416_v8 = vpop.xlane.xlu1 %415 }
 0x46f   : > { %v421_v9 = vsel %vm420_vm7, %v416_v8, 0.0  ;;  %v429_v10 = vrot.slane %v416_v8, 2  ;;  %v438_v11 = vrot.slane %v416_v8, 4  ;;  %v447_v12 = vrot.slane %v416_v8, 6 }
 0x470   : > { %v422_v13 = vrot.slane %v421_v9, 4 }
 0x471   : > { %v431_v15 = vsel %vm420_vm7, %v429_v10, 0.0  ;;  %v440_v16 = vsel %vm420_vm7, %v438_v11, 0.0  ;;  %v449_v17 = vsel %vm420_vm7, %v447_v12, 0.0 }
 0x472   : > { %v423_v18 = vadd.f32 %v422_v13, %v421_v9  ;;  %v432_v19 = vrot.slane %v431_v15, 4  ;;  %v441_v20 = vrot.slane %v440_v16, 4  ;;  %v450_v21 = vrot.slane %v449_v17, 4  ;;  %v419_v22 = vpop.xlane.xlu0 %418 }
 0x473   : > { %v456_v23 = vsel %vm420_vm7, %v419_v22, 0.0  ;;  %v464_v24 = vrot.slane %v419_v22, 2  ;;  %v473_v25 = vrot.slane %v419_v22, 4  ;;  %v482_v26 = vrot.slane %v419_v22, 6 }
 0x474   : > { %v424_v27 = vrot.slane %v423_v18, 2  ;;  %v433_v28 = vadd.f32 %v432_v19, %v431_v15  ;;  %v442_v29 = vadd.f32 %v441_v20, %v440_v16  ;;  %v451_v30 = vadd.f32 %v450_v21, %v449_v17 }
 0x475   : > { %v457_v31 = vrot.slane %v456_v23, 4  ;;  %v466_v32 = vsel %vm420_vm7, %v464_v24, 0.0  ;;  %v475_v33 = vsel %vm420_vm7, %v473_v25, 0.0  ;;  %v484_v34 = vsel %vm420_vm7, %v482_v26, 0.0 }
 0x476   : > { %v425_v35 = vadd.f32 %v424_v27, %v423_v18  ;;  %v434_v36 = vrot.slane %v433_v28, 2  ;;  %v443_v38 = vrot.slane %v442_v29, 2  ;;  %v452_v39 = vrot.slane %v451_v30, 2 }
 0x477   : > { %v458_v42 = vadd.f32 %v457_v31, %v456_v23  ;;  %v467_v44 = vrot.slane %v466_v32, 4  ;;  %v476_v45 = vrot.slane %v475_v33, 4  ;;  %v485_v46 = vrot.slane %v484_v34, 4 }
 0x478   : > { %v426_v47 = vrot.slane %v425_v35, 1  ;;  %v435_v48 = vadd.f32 %v434_v36, %v433_v28  ;;  %v444_v50 = vadd.f32 %v443_v38, %v442_v29  ;;  %v453_v51 = vadd.f32 %v452_v39, %v451_v30 }
 0x479   : > { %v459_v52 = vrot.slane %v458_v42, 2  ;;  %v468_v53 = vadd.f32 %v467_v44, %v466_v32  ;;  %v477_v54 = vadd.f32 %v476_v45, %v475_v33  ;;  %v486_v55 = vadd.f32 %v485_v46, %v484_v34 }
 0x47a   : > { %v436_v56 = vrot.slane %v435_v48, 1  ;;  %v445_v57 = vrot.slane %v444_v50, 1  ;;  %v454_v58 = vrot.slane %v453_v51, 1  ;;  %v427_v3 = vadd.f32 %v426_v47, %v425_v35 }
 0x47b   : > { %v460_v59 = vadd.f32 %v459_v52, %v458_v42  ;;  %v469_v61 = vrot.slane %v468_v53, 2  ;;  %v478_v63 = vrot.slane %v477_v54, 2  ;;  %v487_v2 = vrot.slane %v486_v55, 2 }
 0x47c   : > { %v437_v5 = vadd.f32 %v436_v56, %v435_v48  ;;  %v446_v7 = vadd.f32 %v445_v57, %v444_v50  ;;  %v455_v12 = vadd.f32 %v454_v58, %v453_v51 }
 0x47d   : > { %v461_v8 = vrot.slane %v460_v59, 1  ;;  %v470_v9 = vadd.f32 %v469_v61, %v468_v53  ;;  %v479_v10 = vadd.f32 %v478_v63, %v477_v54  ;;  %v488_v11 = vadd.f32 %v487_v2, %v486_v55 }
 0x47e   : > { %v491_v13 = vsel %vm420_vm7, %v427_v3, %v437_v5 }
 0x47f   : > { %v471_v15 = vrot.slane %v470_v9, 1  ;;  %v480_v16 = vrot.slane %v479_v10, 1  ;;  %v493_v17 = vsel %vm492_vm8, %v491_v13, %v446_v7  ;;  %v489_v19 = vrot.slane %v488_v11, 1 }
 0x480   : > { %v495_v18 = vsel %vm494_vm9, %v493_v17, %v455_v12  ;;  %v462_v20 = vadd.f32 %v461_v8, %v460_v59 }
 0x481   : > { %v472_v21 = vadd.f32 %v471_v15, %v470_v9  ;;  %v1402_v22 = vmul.f32 0.001953125, %v495_v18  ;;  %v481_v23 = vadd.f32 %v480_v16, %v479_v10  ;;  %v490_v24 = vadd.f32 %v489_v19, %v488_v11 }
 0x483   : > { %504 = vperm.xlu1 %1038, %v1402_v22   ;;  %v496_v25 = vsel %vm420_vm7, %v462_v20, %v472_v21 }
 0x484   : > { %v497_v26 = vsel %vm492_vm8, %v496_v25, %v481_v23 }
 0x485   : > { %v498_v27 = vsel %vm494_vm9, %v497_v26, %v490_v24 }
 0x486   : > { %v1408_v28 = vmul.f32 0.001953125, %v498_v27 }
 0x488   : > { %509 = vperm.xlu1 %1038, %v1408_v28  }
 0x48c   : > { %1040 = vset.pattern.permute.xlu1 %v1196_v14 }
 0x502   : > { %v505_v29 = vpop.permute.xlu1 %504 }
 0x503   : > { %v512_v30 = vsub.f32 %v1379_v60, %v505_v29  ;;  %v513_v31 = vsub.f32 %v1381_v62, %v505_v29 }
 0x505   : > { %v516_v32 = vmul.f32 %v512_v30, %v512_v30  ;;  %v517_v33 = vmul.f32 %v513_v31, %v513_v31 }
 0x507   : > { %v510_v34 = vpop.permute.xlu1 %509  ;;  %v520_v35 = vadd.f32 %v517_v33, %v516_v32 }
 0x508   : > { %v514_v36 = vsub.f32 %v1385_v4, %v510_v34  ;;  %v515_v38 = vsub.f32 %v1387_v6, %v510_v34 }
 0x509   : > { %521 = vadd.xlane.f32.xlu0 %v520_v35 }
 0x50a   : > { %v518_v39 = vmul.f32 %v514_v36, %v514_v36  ;;  %v519_v42 = vmul.f32 %v515_v38, %v515_v38 }
 0x50c   : > { %v523_v44 = vadd.f32 %v519_v42, %v518_v39 }
 0x50e   : > { %524 = vadd.xlane.f32.xlu1 %v523_v44 }
 0x596   : > { %v522_v45 = vpop.xlane.xlu0 %521 }
 0x597   : > { %v526_v46 = vsel %vm420_vm7, %v522_v45, 0.0  ;;  %v534_v47 = vrot.slane %v522_v45, 2  ;;  %v543_v48 = vrot.slane %v522_v45, 4  ;;  %v552_v50 = vrot.slane %v522_v45, 6 }
 0x598   : > { %v527_v51 = vrot.slane %v526_v46, 4 }
 0x599   : > { %v536_v52 = vsel %vm420_vm7, %v534_v47, 0.0  ;;  %v545_v53 = vsel %vm420_vm7, %v543_v48, 0.0  ;;  %v554_v54 = vsel %vm420_vm7, %v552_v50, 0.0 }
 0x59a   : > { %v528_v55 = vadd.f32 %v527_v51, %v526_v46  ;;  %v537_v56 = vrot.slane %v536_v52, 4  ;;  %v546_v57 = vrot.slane %v545_v53, 4  ;;  %v555_v58 = vrot.slane %v554_v54, 4 }
 0x59b   : > { %v525_v59 = vpop.xlane.xlu1 %524 }
 0x59c   : > { %v529_v61 = vrot.slane %v528_v55, 2  ;;  %v538_v63 = vadd.f32 %v537_v56, %v536_v52  ;;  %v547_v2 = vadd.f32 %v546_v57, %v545_v53  ;;  %v556_v3 = vadd.f32 %v555_v58, %v554_v54 }
 0x59d   : > { %v561_v5 = vsel %vm420_vm7, %v525_v59, 0.0  ;;  %v569_v7 = vrot.slane %v525_v59, 2  ;;  %v578_v8 = vrot.slane %v525_v59, 4  ;;  %v587_v9 = vrot.slane %v525_v59, 6 }
 0x59e   : > { %v530_v10 = vadd.f32 %v529_v61, %v528_v55  ;;  %v539_v11 = vrot.slane %v538_v63, 2  ;;  %v548_v12 = vrot.slane %v547_v2, 2  ;;  %v557_v13 = vrot.slane %v556_v3, 2 }
 0x59f   : > { %v562_v15 = vrot.slane %v561_v5, 4  ;;  %v571_v16 = vsel %vm420_vm7, %v569_v7, 0.0  ;;  %v580_v17 = vsel %vm420_vm7, %v578_v8, 0.0  ;;  %v589_v18 = vsel %vm420_vm7, %v587_v9, 0.0 }
 0x5a0   : > { %v531_v19 = vrot.slane %v530_v10, 1  ;;  %v540_v20 = vadd.f32 %v539_v11, %v538_v63  ;;  %v549_v21 = vadd.f32 %v548_v12, %v547_v2  ;;  %v558_v23 = vadd.f32 %v557_v13, %v556_v3 }
 0x5a1   : > { %v563_v24 = vadd.f32 %v562_v15, %v561_v5  ;;  %v572_v25 = vrot.slane %v571_v16, 4  ;;  %v581_v26 = vrot.slane %v580_v17, 4  ;;  %v590_v27 = vrot.slane %v589_v18, 4 }
 0x5a2   : > { %v541_v29 = vrot.slane %v540_v20, 1  ;;  %v550_v30 = vrot.slane %v549_v21, 1  ;;  %v559_v31 = vrot.slane %v558_v23, 1  ;;  %v532_v36 = vadd.f32 %v531_v19, %v530_v10 }
 0x5a3   : > { %v564_v32 = vrot.slane %v563_v24, 2  ;;  %v573_v33 = vadd.f32 %v572_v25, %v571_v16  ;;  %v582_v34 = vadd.f32 %v581_v26, %v580_v17  ;;  %v591_v35 = vadd.f32 %v590_v27, %v589_v18 }
 0x5a4   : > { %v542_v38 = vadd.f32 %v541_v29, %v540_v20  ;;  %v551_v39 = vadd.f32 %v550_v30, %v549_v21  ;;  %v560_v47 = vadd.f32 %v559_v31, %v558_v23 }
 0x5a5   : > { %v565_v42 = vadd.f32 %v564_v32, %v563_v24  ;;  %v574_v44 = vrot.slane %v573_v33, 2  ;;  %v583_v45 = vrot.slane %v582_v34, 2  ;;  %v592_v46 = vrot.slane %v591_v35, 2 }
 0x5a6   : > { %v596_v48 = vsel %vm420_vm7, %v532_v36, %v542_v38 }
 0x5a7   : > { %v597_v50 = vsel %vm492_vm8, %v596_v48, %v551_v39  ;;  %v566_v51 = vrot.slane %v565_v42, 1  ;;  %v575_v52 = vadd.f32 %v574_v44, %v573_v33  ;;  %v584_v53 = vadd.f32 %v583_v45, %v582_v34 }
 0x5a8   : > { %v598_v54 = vsel %vm494_vm9, %v597_v50, %v560_v47  ;;  %v593_v55 = vadd.f32 %v592_v46, %v591_v35 }
 0x5a9   : > { %v602_v56 = vmul.f32 0.001953125, %v598_v54  ;;  %v576_v57 = vrot.slane %v575_v52, 1  ;;  %v585_v58 = vrot.slane %v584_v53, 1  ;;  %v567_v61 = vadd.f32 %v566_v51, %v565_v42 }
 0x5aa   : > { %v594_v59 = vrot.slane %v593_v55, 1 }
 0x5ab   : > { %v577_v63 = vadd.f32 %v576_v57, %v575_v52  ;;  %v586_v2 = vadd.f32 %v585_v58, %v584_v53  ;;  %v604_v3 = vadd.f32 1e-05, %v602_v56 }
 0x5ac   : > { %v595_v5 = vadd.f32 %v594_v59, %v593_v55  ;;  %v1202_v59 = vmov 3  }
 0x5ad   : > { %v599_v7 = vsel %vm420_vm7, %v567_v61, %v577_v63  ;;  %1076 = vrsqrt.f32 %v604_v3  ;;  %v1203_v61 = vmov 4  }
 0x5ae   : > { %v600_v8 = vsel %vm492_vm8, %v599_v7, %v586_v2 }
 0x5af   : > { %v601_v9 = vsel %vm494_vm9, %v600_v8, %v595_v5 }
 0x5b0   : > { %v603_v10 = vmul.f32 0.001953125, %v601_v9 }
 0x5b2   : > { %v605_v11 = vadd.f32 1e-05, %v603_v10 }
 0x5b4   : > { %1078 = vrsqrt.f32 %v605_v11 }
 0x5b7   : > { %v1077_v12 = vpop.eup %1076 }
 0x5b8   : > { %v608_v13 = vmul.f32 %v1077_v12, %v1348_v40 }
 0x5ba   : > { %v610_v15 = vmul.f32 %v608_v13, %v1402_v22 }
 0x5bc   : > { %614 = vrot.lane.b32.xlu0 %v610_v15, %s1197_s12 }
 0x5be   : > { %v1079_v16 = vpop.eup %1078 }
 0x5bf   : > { %v609_v17 = vmul.f32 %v1079_v16, %v1354_v41 }
 0x5c1   : > { %v611_v18 = vmul.f32 %v609_v17, %v1408_v28 }
 0x5c3   : > { %616 = vrot.lane.b32.xlu0 %v611_v18, %s1197_s12 }
 0x5c7   : > { %624 = vperm.xlu0 %1039, %v608_v13  }
 0x5cb   : > { %629 = vperm.xlu0 %1039, %v609_v17  }
 0x5cf   : > { %1041 = vset.pattern.permute.xlu0 %v1196_v14 }
 0x62e   : > { %v615_v19 = vpop.permute.xlu0 %614 }
 0x62f   : > { %v620_v20 = vsub.f32 %v1348_v40, %v615_v19 }
 0x631   : > { %638 = vperm.xlu1 %1040, %v620_v20  }
 0x635   : > { %v617_v21 = vpop.permute.xlu0 %616  ;;  %1062 = vset.pattern.permute.xlu1 %v1202_v59 }
 0x636   : > { %v621_v22 = vsub.f32 %v1354_v41, %v617_v21 }
 0x638   : > { %643 = vperm.xlu0 %1041, %v621_v22  }
 0x63c   : > { %1063 = vset.pattern.permute.xlu0 %v1202_v59 }
 0x646   : > { %v625_v23 = vpop.permute.xlu0 %624 }
 0x647   : > { %v632_v24 = vmul.f32 %v625_v23, %v1379_v60  ;;  %v633_v25 = vmul.f32 %v625_v23, %v1381_v62 }
 0x64a   : > { %v630_v29 = vpop.permute.xlu0 %629 }
 0x64b   : > { %v634_v14 = vmul.f32 %v630_v29, %v1385_v4  ;;  %v635_v32 = vmul.f32 %v630_v29, %v1387_v6 }
 0x6b0   : > { %v639_v28 = vpop.permute.xlu1 %638 }
 0x6b1   : > { %v646_v26 = vadd.f32 %v639_v28, %v632_v24  ;;  %v647_v27 = vadd.f32 %v639_v28, %v633_v25 }
 0x6b3   : > { %v925_v30 = vmul.f32 -1.442695, %v646_v26  ;;  %v926_v31 = vmul.f32 -1.442695, %v647_v27 }
 0x6b5   : > { %1080 = vpow2.f32 %v925_v30 }
 0x6b6   : > { %1082 = vpow2.f32 %v926_v31 }
 0x6b7   : > { %v644_v33 = vpop.permute.xlu0 %643 }
 0x6b8   : > { %v648_v34 = vadd.f32 %v644_v33, %v634_v14  ;;  %v649_v35 = vadd.f32 %v644_v33, %v635_v32 }
 0x6ba   : > { %v927_v36 = vmul.f32 -1.442695, %v648_v34  ;;  %v928_v38 = vmul.f32 -1.442695, %v649_v35 }
 0x6bc   : > { %1084 = vpow2.f32 %v927_v36 }
 0x6bd   : > { %1086 = vpow2.f32 %v928_v38 }
 0x6bf   : > { %v1081_v60 = vpop.eup %1080 }
 0x6c0   : > { %v1083_v62 = vpop.eup %1082  ;;  %v662_v39 = vadd.f32 1.0, %v1081_v60 }
 0x6c1   : > { %v663_v42 = vadd.f32 1.0, %v1083_v62 }
 0x6c2   : > { %1088 = vrcp.f32 %v662_v39 }
 0x6c3   : > { %1090 = vrcp.f32 %v663_v42 }
 0x6c6   : > { %v1085_v44 = vpop.eup %1084 }
 0x6c7   : > { %v1087_v45 = vpop.eup %1086  ;;  %v664_v46 = vadd.f32 1.0, %v1085_v44 }
 0x6c8   : > { %v665_v4 = vadd.f32 1.0, %v1087_v45 }
 0x6c9   : > { %1092 = vrcp.f32 %v664_v46 }
 0x6ca   : > { %1094 = vrcp.f32 %v665_v4 }
 0x6cc   : > { %v1089_v6 = vpop.eup %1088 }
 0x6cd   : > { %v1091_v47 = vpop.eup %1090  ;;  %v674_v51 = vmul.f32 %v1089_v6, %v646_v26 }
 0x6ce   : > { %v675_v53 = vmul.f32 %v1091_v47, %v647_v27 }
 0x6d3   : > { %v1093_v48 = vpop.eup %1092 }
 0x6d4   : > { %v1095_v50 = vpop.eup %1094  ;;  %v676_v52 = vmul.f32 %v1093_v48, %v648_v34 }
 0x6d5   : > { %v677_v54 = vmul.f32 %v1095_v50, %v649_v35 }
 0x6d6   : > { %v1052_v55 = vpack.i.bf16 %v676_v52, %v674_v51  ;;  %v960_v56 = vpack.c.bf16 %v676_v52, %v674_v51 }
 0x6d7   : > { %v958_v57 = vpack.c.bf16 %v677_v54, %v675_v53  ;;  %v1047_v58 = vpack.i.bf16 %v677_v54, %v675_v53 }
 0x6d8   : > { %1053 = vrot.lane.b32.xlu1 %v1052_v55, %s1200_s13  ;;  %1043 = vrot.lane.b32.xlu0 %v1052_v55, %s1197_s12 }
 0x6dc   : > { %1048 = vrot.lane.b32.xlu0 %v1047_v58, %s1197_s12  ;;  %713 = vperm.xlu1 %1062, %v1348_v40  }
 0x6e0   : > { %1058 = vrot.lane.b32.xlu0 %v1047_v58, %s1200_s13  ;;  %1064 = vset.pattern.permute.xlu1 %v1203_v61  ;;  %s1489_s13 = scalar_lea.hbm %s1537_s5, %s945_s30 }
 0x6e1   : > { %805 = vperm.xlu1 %1064, %v1348_v40  }
 0x6e4   : > { %717 = vperm.xlu0 %1063, %v1354_v41  }
 0x6e5   : > { %809 = vperm.xlu1 %1064, %v1354_v41  }
 0x6e8   : > { %1065 = vset.pattern.permute.xlu0 %v1203_v61 }
 0x74a   : > { %v1044_v63 = vpop.permute.xlu0 %1043  ;;  %v1054_v9 = vpop.permute.xlu1 %1053 }
 0x74b   : > { %v1046_v3 = vunpack.i.h.bf16 %v1044_v63  ;;  %v1045_v5 = vunpack.i.l.bf16 %v1044_v63  ;;  %v1056_v16 = vunpack.i.h.bf16 %v1054_v9  ;;  %v1055_v17 = vunpack.i.l.bf16 %v1054_v9 }
 0x74e   : > { %v1049_v2 = vpop.permute.xlu0 %1048 }
 0x74f   : > { %v1051_v7 = vunpack.i.h.bf16 %v1049_v2  ;;  %v1050_v8 = vunpack.i.l.bf16 %v1049_v2 }
 0x751   : > { %v686_v10 = vsel %vm302_vm0, %v1045_v5, %v1050_v8  ;;  %v687_v11 = vsel %vm302_vm0, %v1046_v3, %v1051_v7  ;;  %v688_v12 = vsel %vm302_vm0, %v1050_v8, %v1045_v5  ;;  %v689_v40 = vsel %vm302_vm0, %v1051_v7, %v1046_v3 }
 0x752   : > { %v1059_v41 = vpop.permute.xlu0 %1058  ;;  %v953_v13 = vpack.c.bf16 %v687_v11, %v686_v10  ;;  %v955_v15 = vpack.c.bf16 %v689_v40, %v688_v12 }
 0x753   : > { %v1061_v18 = vunpack.i.h.bf16 %v1059_v41  ;;  %v1060_v19 = vunpack.i.l.bf16 %v1059_v41 }
 0x754   : > { %954 = vmatprep.subr.bf16.mxu1 %v953_v13 }
 0x755   : > { %v705_v20 = vsel %vm313_vm4, %v1061_v18, %v1056_v16  ;;  %v704_v21 = vsel %vm313_vm4, %v1060_v19, %v1055_v17  ;;  %957 = vmatpush1.bf16.msk.msra.mxu1 %vm956_vm10, %v955_v15  ;;  %v702_v23 = vsel %vm313_vm4, %v1055_v17, %v1060_v19  ;;  %v703_v24 = vsel %vm313_vm4, %v1056_v16, %v1061_v18 }
 0x756   : > { %959 = vmatprep.subr.bf16.mxu1 %v958_v57  ;;  %v962_v22 = vpack.c.bf16 %v705_v20, %v704_v21  ;;  %v965_v25 = vpack.c.bf16 %v703_v24, %v702_v23 }
 0x759   : > { %961 = vmatpush1.bf16.msra.mxu1 %v960_v56 }
 0x75a   : > { %964 = vmatprep.subr.msk.bf16.mxu1 %vm963_vm11, %v962_v22 }
 0x75b   : > { %v714_v28 = vpop.permute.xlu1 %713 }
 0x75d   : > { %966 = vmatpush1.bf16.msra.mxu1 %v965_v25 }
 0x75e   : > { %739 = vmatprep.subr.mxu1 %v1327_v1 }
 0x760   : > { %v806_v1 = vpop.permute.xlu1 %805 }
 0x761   : > { %740 = vmatpush1.msra.mxu1 %v1325_v0 }
 0x762   : > { %937 = vmatmul.mubr.msk.f32.vlgmr.msra.gmra.mrb[0].mxu1 %vm720_vm12, %v710_v49 }
 0x763   : > { %797 = vmatprep.mubr.f32.mxu1 %v1198_v37  ;;  %v718_v31 = vpop.permute.xlu0 %717 }
 0x764   : > { %v810_v34 = vpop.permute.xlu1 %809 }
 0x766   : > { %938 = vmatmul.mubr.msk.f32.gmra.mrb[2].mxu1 %vm720_vm12, %v711_v43 }
 0x835   : > { %v793_v26 = vpop.f32.mrb[0].mxu1 }
 0x836   : > { %v794_v27 = vadd.f32 %v793_v26, %v714_v28  ;;  %v795_v29 = vpop.f32.mrb[1].mxu1 }
 0x837   : > { %v796_v30 = vadd.f32 %v795_v29, %v714_v28 }
 0x838   : > { %v812_v14 = vadd.f32 %v806_v1, %v794_v27 }
 0x839   : > { %v813_v0 = vadd.f32 %v806_v1, %v796_v30  ;;  %v799_v37 = vpop.f32.mrb[2].mxu1 }
 0x83a   : > { %816 = vst [vmem:[%s232_s8] sm:$0xff] %v812_v14  ;;  %v800_v32 = vadd.f32 %v799_v37, %v718_v31  ;;  %v801_v33 = vpop.f32.mrb[3].mxu1 }
 0x83b   : > { %817 = vst [vmem:[%s232_s8 + $0x8] sm:$0xff] %v813_v0  ;;  %v802_v35 = vadd.f32 %v801_v33, %v718_v31 }
 0x83c   : > { %v814_v36 = vadd.f32 %v810_v34, %v800_v32 }
 0x83d   : > { %v815_v38 = vadd.f32 %v810_v34, %v802_v35 }
 0x83e   : > { %818 = vst [vmem:[%s232_s8 + $0x10] sm:$0xff] %v814_v36 }
 0x83f   : > { %819 = vst [vmem:[%s232_s8 + $0x18] sm:$0xff] %v815_v38 }
 0x840   : > { %1137 = shalt.err (!%p1134_p7)
}
 0x841   : > { %s1138_s23 = scalar_lea.hbm %s1489_s13, 512  ;;  %s1142_s6 = scalar_lea.hbm %s1537_s5, 1024 }
 0x842   : > { %p1139_p8 = scmp.ne.s32.totalorder %s1489_s13, %s1138_s23  ;;  %p1143_p1 = scmp.lt.u32.totalorder %s1489_s13, %s1537_s5 }
 0x843   : > { %p1144_p0 = scmp.lt.u32.totalorder %s1142_s6, %s1138_s23  ;;  %p1146_p6 = scmp.lt.u32.totalorder %s1138_s23, %s1489_s13 }
 0x844   : > { %p1140_p11 = pnand %p1139_p8, %p1548_p9 }
 0x845   : > { %p1145_p5 = por %p1144_p0, %p1143_p1 }
 0x846   : > { %p1141_p13 = pneg %p1140_p11 }
 0x847   : > { %p1147_p10 = por %p1146_p6, %p1145_p5 }
 0x849   : > { %p1148_p12 = pnand %p1147_p10, %p1141_p13 }
 0x84b   : > { %1151 = shalt.err (!%p1148_p12)
}
 0x84c   : > { %s1205_s8 = smov 256   ;;  %s1206_s30 = smov 16  }
 0x84d   : > { %971 = dma.vmem_to_hbm [thread:$0]  (%p1548_p9), %s1484_s11, 512, %s1489_s13, %s1491_s14, %s1205_s8, %s1205_s8, %s1206_s30  }
 0x84e PF: > { %p983_p2 = scmp.ge.s32.totalorder %s1190_s21, 2  ;;  %s849_s7 = sand.u32 1, %s1178_s18  }
 0x84f   : > { %p1549_p3 = scmp.ne.s32.totalorder %s1542_s29, 0  ;;  %s850_s12 = scalar_lea.sflag [#allocation4], %s849_s7 }
 0x851   : > { %p978_p4 = pnand %p983_p2, %p1549_p3 }
 0x853   : > { %1173 = dma.done.wait (!%p978_p4), %s850_s12, 512  }
 0x854   : > { %1175 = vsyncadd (!%p978_p4), %s850_s12, 4294966784  ;;  %p16_p7 = scmp.ge.s32.totalorder %s1262_s24, 4   ;;  %s1550_s18 = smov %s1182_s19 }
 0x855   : > { %s1551_s19 = smov %s1186_s20  ;;  %s1552_s20 = smov %s1273_s27 }
 0x856   : > { %s1553_s21 = smov %s1262_s24  ;;  %18 = sbr.rel (!%p16_p7) target bundleno = 4 (0x4), region = 80 }
 0x85d   :  { %855 = vsyncpa [#allocation3], 1 }
 0x85e   :  { %857 = vsyncpa [#allocation3 + $0x1], 1 }
 0x85f   :  { %858 = vsyncpa [#allocation4], 1 }
 0x860   :  { %860 = vsyncpa [#allocation4 + $0x1], 1 }

</bundles_post_ra>
